<compile_context>
chip_gen: v6e
topology: v6e:2x2x1
jax: 0.10.0
libtpu: 0.0.40
codegen_flags: <defaults>
</compile_context>

<pallas_src>
import functools

import jax
import jax.numpy as jnp
from jax.experimental import pallas as pl
from jax.experimental.pallas import tpu as pltpu

IN_DIM = 28 * 28   # 784
H1 = 256
H2 = 64


def _round_up(n, m):
    return (n + m - 1) // m * m


def _pad_to(a, shape):
    pads = [(0, t - s) for s, t in zip(a.shape, shape)]
    if any(p[1] for p in pads):
        return jnp.pad(a, pads)
    return a


def _ae_kernel(x_ref,
               w1_ref, b1_ref,
               w2_ref, b2_ref,
               w3_ref, b3_ref,
               w4_ref, b4_ref,
               o_ref):
    """Fused 4-layer MLP forward for one batch tile.

    Matmuls run on the MXU with bf16 operands + f32 accumulation; the bias
    add / ReLU / sigmoid epilogues stay in f32 on the VPU/EUP.
    """
    cdt = w1_ref.dtype  # compute dtype for MXU operands (bf16 by default)

    x = x_ref[...]  # already in compute dtype

    # encoder
    h = jnp.dot(x, w1_ref[...], preferred_element_type=jnp.float32)
    h = jnp.maximum(h + b1_ref[...], 0.0)
    h = jnp.dot(h.astype(cdt), w2_ref[...], preferred_element_type=jnp.float32)
    h = jnp.maximum(h + b2_ref[...], 0.0)

    # decoder
    h = jnp.dot(h.astype(cdt), w3_ref[...], preferred_element_type=jnp.float32)
    h = jnp.maximum(h + b3_ref[...], 0.0)
    h = jnp.dot(h.astype(cdt), w4_ref[...], preferred_element_type=jnp.float32)
    o_ref[...] = jax.nn.sigmoid(h + b4_ref[...]).astype(o_ref.dtype)


@functools.partial(jax.jit, static_argnames=("batch_tile", "compute_dtype"))
def autoencoder_forward(x, params, *, batch_tile=256, compute_dtype=jnp.bfloat16):
    """x: [B, 784] float32. params: dict of f32 weights/biases. Returns [B, 784] f32."""
    B, D = x.shape
    assert D == IN_DIM
    assert batch_tile % 8 == 0
    cdt = jnp.dtype(compute_dtype)

    # Lane-dense padded feature dims.
    DP = _round_up(IN_DIM, 128)   # 784 -> 896 (7 x 128)
    H2P = _round_up(H2, 128)      # 64  -> 128

    # Batch tile: as large as requested but never larger than the (padded) batch.
    tile = min(batch_tile, _round_up(B, 8))
    Bp = _round_up(B, tile)

    # Pad + cast operands.  Zero-padded K rows / N cols contribute nothing.
    xp = _pad_to(x, (Bp, IN_DIM))
    xp = _pad_to(xp, (Bp, DP)).astype(cdt)

    w1 = _pad_to(params["w1"], (DP, H1)).astype(cdt)
    b1 = params["b1"].astype(jnp.float32)
    w2 = _pad_to(params["w2"], (H1, H2P)).astype(cdt)
    b2 = _pad_to(params["b2"], (1, H2P)).astype(jnp.float32)
    w3 = _pad_to(params["w3"], (H2P, H1)).astype(cdt)
    b3 = params["b3"].astype(jnp.float32)
    w4 = _pad_to(params["w4"], (H1, DP)).astype(cdt)
    b4 = _pad_to(params["b4"], (1, DP)).astype(jnp.float32)

    full = lambda shape: pl.BlockSpec(shape, lambda i: (0, 0))

    grid_spec = pltpu.PrefetchScalarGridSpec(
        num_scalar_prefetch=0,
        grid=(Bp // tile,),
        in_specs=[
            pl.BlockSpec((tile, DP), lambda i: (i, 0)),  # x tile
            full((DP, H1)),  full((1, H1)),
            full((H1, H2P)), full((1, H2P)),
            full((H2P, H1)), full((1, H1)),
            full((H1, DP)),  full((1, DP)),
        ],
        out_specs=pl.BlockSpec((tile, DP), lambda i: (i, 0)),
    )

    # Advisory cost estimate for XLA's scheduler.
    flops = 2 * Bp * (DP * H1 + H1 * H2P + H2P * H1 + H1 * DP)
    transcendentals = Bp * DP  # sigmoid
    weight_bytes = sum(int(a.size) * a.dtype.itemsize
                       for a in (w1, b1, w2, b2, w3, b3, w4, b4))
    act_bytes = int(xp.size) * cdt.itemsize + Bp * DP * 4
    cost = pl.CostEstimate(flops=int(flops),
                           transcendentals=int(transcendentals),
                           bytes_accessed=int(weight_bytes + act_bytes))

    # VMEM budget: double-buffered x/out tiles + double-buffered weights.
    est_vmem = 2 * (tile * DP * cdt.itemsize + tile * DP * 4) \
        + 2 * weight_bytes + (1 << 20)
    vmem_limit = int(min(est_vmem, 100 << 20)) if est_vmem > (32 << 20) else None

    out = pl.pallas_call(
        _ae_kernel,
        out_shape=jax.ShapeDtypeStruct((Bp, DP), x.dtype),
        grid_spec=grid_spec,
        cost_estimate=cost,
        compiler_params=pltpu.CompilerParams(
            dimension_semantics=("parallel",),
            vmem_limit_bytes=vmem_limit),
    )(xp, w1, b1, w2, b2, w3, b3, w4, b4)

    return out[:B, :IN_DIM]


def init_params(key):
    """Deterministic init mirroring nn.Linear's U(-1/sqrt(fan_in), 1/sqrt(fan_in)).

    Weights stored as (in_features, out_features): x @ W + b  ==  PyTorch x @ W.T + b.
    """
    def linear(k, fan_in, fan_out):
        kw, kb = jax.random.split(k)
        bound = 1.0 / jnp.sqrt(fan_in)
        w = jax.random.uniform(kw, (fan_in, fan_out), jnp.float32, -bound, bound)
        b = jax.random.uniform(kb, (1, fan_out), jnp.float32, -bound, bound)
        return w, b

    k1, k2, k3, k4 = jax.random.split(key, 4)
    w1, b1 = linear(k1, IN_DIM, H1)
    w2, b2 = linear(k2, H1, H2)
    w3, b3 = linear(k3, H2, H1)
    w4, b4 = linear(k4, H1, IN_DIM)
    return dict(w1=w1, b1=b1, w2=w2, b2=b2, w3=w3, b3=b3, w4=w4, b4=b4)


def reference_forward(x, p, compute_dtype=jnp.float32):
    """Plain JAX reference (operands cast to compute_dtype, f32 accumulation)."""
    cdt = jnp.dtype(compute_dtype)

    def lin(h, w, b):
        y = jnp.dot(h.astype(cdt), w.astype(cdt),
                    preferred_element_type=jnp.float32)
        return y + b.astype(jnp.float32)

    h = jnp.maximum(lin(x, p["w1"], p["b1"]), 0.0)
    h = jnp.maximum(lin(h, p["w2"], p["b2"]), 0.0)
    h = jnp.maximum(lin(h, p["w3"], p["b3"]), 0.0)
    return jax.nn.sigmoid(lin(h, p["w4"], p["b4"]))


if __name__ == "__main__":
    key = jax.random.PRNGKey(0)
    k_param, k_x = jax.random.split(key)

    params = init_params(k_param)

    # Small batch of "noisy MNIST-like" inputs, pre-flattened to [B, 784].
    B = 8
    x = jax.random.uniform(k_x, (B, IN_DIM), jnp.float32)

    out = autoencoder_forward(x, params)        # bf16 MXU path, f32 epilogues
    out = jax.block_until_ready(out)
    assert out.shape == (B, IN_DIM)

    # Matched-precision reference (bf16 operands, f32 accum) -> tight tolerance.
    ref_bf16 = reference_forward(x, params, compute_dtype=jnp.bfloat16)
    assert jnp.allclose(out, ref_bf16, atol=1e-3, rtol=1e-3), \
        "mismatch vs bf16-precision reference"

    # Sanity vs full-f32 reference (looser tolerance: bf16 operand rounding).
    ref_f32 = reference_forward(x, params, compute_dtype=jnp.float32)
    assert jnp.allclose(out, ref_f32, atol=5e-2, rtol=5e-2), \
        "mismatch vs f32 reference"

    print("KERNEL_OK")
</pallas_src>

<mosaic_0001>
module attributes {stable_mosaic.version = 11 : i64} {
  func.func @_ae_kernel(%arg0: i32, %arg1: memref<8x896xbf16, #tpu.memory_space<vmem>>, %arg2: memref<896x256xbf16, #tpu.memory_space<vmem>>, %arg3: memref<1x256xf32, #tpu.memory_space<vmem>>, %arg4: memref<256x128xbf16, #tpu.memory_space<vmem>>, %arg5: memref<1x128xf32, #tpu.memory_space<vmem>>, %arg6: memref<128x256xbf16, #tpu.memory_space<vmem>>, %arg7: memref<1x256xf32, #tpu.memory_space<vmem>>, %arg8: memref<256x896xbf16, #tpu.memory_space<vmem>>, %arg9: memref<1x896xf32, #tpu.memory_space<vmem>>, %arg10: memref<8x896xf32, #tpu.memory_space<vmem>>) attributes {dimension_semantics = [#tpu.dimension_semantics<parallel>], iteration_bounds = array<i64: 1>, scalar_prefetch = 0 : i64, scratch_operands = 0 : i64, tpu.core_type = #tpu.core_type<tc>, window_params = [{transform_indices = @transform_0, window_bounds = array<i64: 8, 896>}, {pipeline_mode = #tpu.pipeline_mode<synchronous>, transform_indices = @transform_1, window_bounds = array<i64: 896, 256>}, {pipeline_mode = #tpu.pipeline_mode<synchronous>, transform_indices = @transform_2, window_bounds = array<i64: 1, 256>}, {pipeline_mode = #tpu.pipeline_mode<synchronous>, transform_indices = @transform_3, window_bounds = array<i64: 256, 128>}, {pipeline_mode = #tpu.pipeline_mode<synchronous>, transform_indices = @transform_4, window_bounds = array<i64: 1, 128>}, {pipeline_mode = #tpu.pipeline_mode<synchronous>, transform_indices = @transform_5, window_bounds = array<i64: 128, 256>}, {pipeline_mode = #tpu.pipeline_mode<synchronous>, transform_indices = @transform_6, window_bounds = array<i64: 1, 256>}, {pipeline_mode = #tpu.pipeline_mode<synchronous>, transform_indices = @transform_7, window_bounds = array<i64: 256, 896>}, {pipeline_mode = #tpu.pipeline_mode<synchronous>, transform_indices = @transform_8, window_bounds = array<i64: 1, 896>}, {transform_indices = @transform_9, window_bounds = array<i64: 8, 896>}]} {
    %c0 = arith.constant 0 : index
    %c0_0 = arith.constant 0 : index
    %0 = vector.load %arg1[%c0, %c0_0] : memref<8x896xbf16, #tpu.memory_space<vmem>>, vector<8x896xbf16>
    %c0_1 = arith.constant 0 : index
    %c0_2 = arith.constant 0 : index
    %1 = vector.load %arg2[%c0_1, %c0_2] : memref<896x256xbf16, #tpu.memory_space<vmem>>, vector<896x256xbf16>
    %cst = arith.constant dense<0.000000e+00> : vector<8x256xf32>
    %2 = tpu.matmul %0, %1, %cst {dimension_numbers = #tpu.dot_dimension_numbers<[1], [0], [0], [1], [0, 0, 1, 1], [], []>} : vector<8x896xbf16>, vector<896x256xbf16>, vector<8x256xf32> -> vector<8x256xf32>
    %c0_3 = arith.constant 0 : index
    %c0_4 = arith.constant 0 : index
    %3 = vector.load %arg3[%c0_3, %c0_4] : memref<1x256xf32, #tpu.memory_space<vmem>>, vector<1x256xf32>
    %4 = vector.broadcast %3 : vector<1x256xf32> to vector<8x256xf32>
    %5 = arith.addf %2, %4 : vector<8x256xf32>
    %cst_5 = arith.constant 0.000000e+00 : f32
    %6 = vector.broadcast %cst_5 : f32 to vector<8x256xf32>
    %7 = arith.maximumf %5, %6 : vector<8x256xf32>
    %8 = arith.truncf %7 : vector<8x256xf32> to vector<8x256xbf16>
    %c0_6 = arith.constant 0 : index
    %c0_7 = arith.constant 0 : index
    %9 = vector.load %arg4[%c0_6, %c0_7] : memref<256x128xbf16, #tpu.memory_space<vmem>>, vector<256x128xbf16>
    %cst_8 = arith.constant dense<0.000000e+00> : vector<8x128xf32>
    %10 = tpu.matmul %8, %9, %cst_8 {dimension_numbers = #tpu.dot_dimension_numbers<[1], [0], [0], [1], [0, 0, 1, 1], [], []>} : vector<8x256xbf16>, vector<256x128xbf16>, vector<8x128xf32> -> vector<8x128xf32>
    %c0_9 = arith.constant 0 : index
    %c0_10 = arith.constant 0 : index
    %11 = vector.load %arg5[%c0_9, %c0_10] : memref<1x128xf32, #tpu.memory_space<vmem>>, vector<1x128xf32>
    %12 = vector.broadcast %11 : vector<1x128xf32> to vector<8x128xf32>
    %13 = arith.addf %10, %12 : vector<8x128xf32>
    %cst_11 = arith.constant 0.000000e+00 : f32
    %14 = vector.broadcast %cst_11 : f32 to vector<8x128xf32>
    %15 = arith.maximumf %13, %14 : vector<8x128xf32>
    %16 = arith.truncf %15 : vector<8x128xf32> to vector<8x128xbf16>
    %c0_12 = arith.constant 0 : index
    %c0_13 = arith.constant 0 : index
    %17 = vector.load %arg6[%c0_12, %c0_13] : memref<128x256xbf16, #tpu.memory_space<vmem>>, vector<128x256xbf16>
    %cst_14 = arith.constant dense<0.000000e+00> : vector<8x256xf32>
    %18 = tpu.matmul %16, %17, %cst_14 {dimension_numbers = #tpu.dot_dimension_numbers<[1], [0], [0], [1], [0, 0, 1, 1], [], []>} : vector<8x128xbf16>, vector<128x256xbf16>, vector<8x256xf32> -> vector<8x256xf32>
    %c0_15 = arith.constant 0 : index
    %c0_16 = arith.constant 0 : index
    %19 = vector.load %arg7[%c0_15, %c0_16] : memref<1x256xf32, #tpu.memory_space<vmem>>, vector<1x256xf32>
    %20 = vector.broadcast %19 : vector<1x256xf32> to vector<8x256xf32>
    %21 = arith.addf %18, %20 : vector<8x256xf32>
    %cst_17 = arith.constant 0.000000e+00 : f32
    %22 = vector.broadcast %cst_17 : f32 to vector<8x256xf32>
    %23 = arith.maximumf %21, %22 : vector<8x256xf32>
    %24 = arith.truncf %23 : vector<8x256xf32> to vector<8x256xbf16>
    %c0_18 = arith.constant 0 : index
    %c0_19 = arith.constant 0 : index
    %25 = vector.load %arg8[%c0_18, %c0_19] : memref<256x896xbf16, #tpu.memory_space<vmem>>, vector<256x896xbf16>
    %cst_20 = arith.constant dense<0.000000e+00> : vector<8x896xf32>
    %26 = tpu.matmul %24, %25, %cst_20 {dimension_numbers = #tpu.dot_dimension_numbers<[1], [0], [0], [1], [0, 0, 1, 1], [], []>} : vector<8x256xbf16>, vector<256x896xbf16>, vector<8x896xf32> -> vector<8x896xf32>
    %c0_21 = arith.constant 0 : index
    %c0_22 = arith.constant 0 : index
    %27 = vector.load %arg9[%c0_21, %c0_22] : memref<1x896xf32, #tpu.memory_space<vmem>>, vector<1x896xf32>
    %28 = vector.broadcast %27 : vector<1x896xf32> to vector<8x896xf32>
    %29 = arith.addf %26, %28 : vector<8x896xf32>
    %30 = arith.negf %29 : vector<8x896xf32>
    %31 = math.exp %30 : vector<8x896xf32>
    %cst_23 = arith.constant 1.000000e+00 : f32
    %32 = vector.broadcast %cst_23 : f32 to vector<8x896xf32>
    %33 = arith.addf %32, %31 : vector<8x896xf32>
    %34 = arith.divf %32, %33 : vector<8x896xf32>
    %c0_24 = arith.constant 0 : index
    %c0_25 = arith.constant 0 : index
    %35 = vector.load %arg10[%c0_24, %c0_25] : memref<8x896xf32, #tpu.memory_space<vmem>>, vector<8x896xf32>
    tpu.vector_store %arg10[%c0_24, %c0_25], %34 {strides = array<i32>} : memref<8x896xf32, #tpu.memory_space<vmem>>, vector<8x896xf32>,
    return
  }
  func.func @transform_0(%arg0: i32) -> (i32, i32) {
    %c0_i32 = arith.constant 0 : i32
    %c0_i32_0 = arith.constant 0 : i32
    return %arg0, %c0_i32 : i32, i32
  }
  func.func @transform_1(%arg0: i32) -> (i32, i32) {
    %c0_i32 = arith.constant 0 : i32
    %c0_i32_0 = arith.constant 0 : i32
    %c0_i32_1 = arith.constant 0 : i32
    return %c0_i32, %c0_i32_0 : i32, i32
  }
  func.func @transform_2(%arg0: i32) -> (i32, i32) {
    %c0_i32 = arith.constant 0 : i32
    %c0_i32_0 = arith.constant 0 : i32
    %c0_i32_1 = arith.constant 0 : i32
    return %c0_i32, %c0_i32_0 : i32, i32
  }
  func.func @transform_3(%arg0: i32) -> (i32, i32) {
    %c0_i32 = arith.constant 0 : i32
    %c0_i32_0 = arith.constant 0 : i32
    %c0_i32_1 = arith.constant 0 : i32
    return %c0_i32, %c0_i32_0 : i32, i32
  }
  func.func @transform_4(%arg0: i32) -> (i32, i32) {
    %c0_i32 = arith.constant 0 : i32
    %c0_i32_0 = arith.constant 0 : i32
    %c0_i32_1 = arith.constant 0 : i32
    return %c0_i32, %c0_i32_0 : i32, i32
  }
  func.func @transform_5(%arg0: i32) -> (i32, i32) {
    %c0_i32 = arith.constant 0 : i32
    %c0_i32_0 = arith.constant 0 : i32
    %c0_i32_1 = arith.constant 0 : i32
    return %c0_i32, %c0_i32_0 : i32, i32
  }
  func.func @transform_6(%arg0: i32) -> (i32, i32) {
    %c0_i32 = arith.constant 0 : i32
    %c0_i32_0 = arith.constant 0 : i32
    %c0_i32_1 = arith.constant 0 : i32
    return %c0_i32, %c0_i32_0 : i32, i32
  }
  func.func @transform_7(%arg0: i32) -> (i32, i32) {
    %c0_i32 = arith.constant 0 : i32
    %c0_i32_0 = arith.constant 0 : i32
    %c0_i32_1 = arith.constant 0 : i32
    return %c0_i32, %c0_i32_0 : i32, i32
  }
  func.func @transform_8(%arg0: i32) -> (i32, i32) {
    %c0_i32 = arith.constant 0 : i32
    %c0_i32_0 = arith.constant 0 : i32
    %c0_i32_1 = arith.constant 0 : i32
    return %c0_i32, %c0_i32_0 : i32, i32
  }
  func.func @transform_9(%arg0: i32) -> (i32, i32) {
    %c0_i32 = arith.constant 0 : i32
    %c0_i32_0 = arith.constant 0 : i32
    return %arg0, %c0_i32 : i32, i32
  }
}

</mosaic_0001>

<bundles_post_ra>
// kernel: autoencoder_forward.1
= control target key start
LH: loop header
LB: loop body
LE: loop exit
PB: predicated region body
PF: predicated region fallthrough
CT: control target
= control target key end

     0   :  { %s3834_s0 = inlined_call_operand.vmem [shape: bf16[8,896], index: 0, kind: input, shape index: {}]   ;;  %s3835_s1 = inlined_call_operand.vmem [shape: bf16[896,256], index: 1, kind: input, shape index: {}]   ;;  %s3836_s2 = inlined_call_operand.vmem [shape: f32[1,256], index: 2, kind: input, shape index: {}]   ;;  %s3837_s3 = inlined_call_operand.vmem [shape: bf16[256,128], index: 3, kind: input, shape index: {}]   ;;  %s3838_s4 = inlined_call_operand.vmem [shape: f32[1,128], index: 4, kind: input, shape index: {}]   ;;  %s3839_s5 = inlined_call_operand.vmem [shape: bf16[128,256], index: 5, kind: input, shape index: {}]   ;;  %s3840_s6 = inlined_call_operand.vmem [shape: f32[1,256], index: 6, kind: input, shape index: {}]   ;;  %s3841_s7 = inlined_call_operand.vmem [shape: bf16[256,896], index: 7, kind: input, shape index: {}]   ;;  %s3842_s8 = inlined_call_operand.vmem [shape: f32[1,896], index: 8, kind: input, shape index: {}]   ;;  %s3843_s9 = inlined_call_operand.hbm [shape: f32[8,896], index: 9, kind: output, shape index: {}]  }
   0x1   :  { %v2529_v0 = vld [vmem:[%s3835_s1 + $0x74] ss:$8 sps:$4 sm:$0xff]   ;;  %v2531_v1 = vld [vmem:[%s3835_s1 + $0x70] ss:$8 sps:$4 sm:$0xff]   ;;  %v2535_v4 = vld [vmem:[%s3835_s1 + $0x64] ss:$8 sps:$4 sm:$0xff]  }
   0x2   :  { %747 = vmatprep.subr.bf16.mxu0 %v2529_v0  ;;  %v2532_v2 = vld [vmem:[%s3835_s1 + $0x174] ss:$8 sps:$4 sm:$0xff]   ;;  %v2534_v3 = vld [vmem:[%s3835_s1 + $0x170] ss:$8 sps:$4 sm:$0xff]   ;;  %v2537_v5 = vld [vmem:[%s3835_s1 + $0x60] ss:$8 sps:$4 sm:$0xff]  }
   0x3   :  { %748 = vmatpush1.bf16.msra.mxu0 %v2531_v1  ;;  %788 = vmatprep.subr.bf16.mxu1 %v2532_v2  ;;  %v2538_v6 = vld [vmem:[%s3835_s1 + $0x164] ss:$8 sps:$4 sm:$0xff]   ;;  %v2540_v7 = vld [vmem:[%s3835_s1 + $0x160] ss:$8 sps:$4 sm:$0xff]   ;;  %v2541_v8 = vld [vmem:[%s3835_s1 + $0x54] ss:$8 sps:$4 sm:$0xff]  }
   0x4   :  { %789 = vmatpush1.bf16.msra.mxu1 %v2534_v3  ;;  %749 = vmatprep.subr.bf16.mxu0 %v2535_v4  ;;  %v2543_v9 = vld [vmem:[%s3835_s1 + $0x50] ss:$8 sps:$4 sm:$0xff]   ;;  %v2544_v10 = vld [vmem:[%s3835_s1 + $0x154] ss:$8 sps:$4 sm:$0xff]   ;;  %v2547_v11 = vld [vmem:[%s3835_s1 + $0x44] ss:$8 sps:$4 sm:$0xff]  }
   0x5   :  { %790 = vmatprep.subr.bf16.mxu1 %v2538_v6  ;;  %v2546_v12 = vld [vmem:[%s3835_s1 + $0x150] ss:$8 sps:$4 sm:$0xff]   ;;  %v2550_v13 = vld [vmem:[%s3835_s1 + $0x144] ss:$8 sps:$4 sm:$0xff]   ;;  %v2549_v14 = vld [vmem:[%s3835_s1 + $0x40] ss:$8 sps:$4 sm:$0xff]  }
   0x6   :  { %v2553_v15 = vld [vmem:[%s3835_s1 + $0x34] ss:$8 sps:$4 sm:$0xff]   ;;  %v2552_v16 = vld [vmem:[%s3835_s1 + $0x140] ss:$8 sps:$4 sm:$0xff]   ;;  %v2555_v18 = vld [vmem:[%s3835_s1 + $0x30] ss:$8 sps:$4 sm:$0xff]  }
   0x7   :  { %750 = vmatpush1.bf16.msra.mxu0 %v2537_v5  ;;  %v2556_v17 = vld [vmem:[%s3835_s1 + $0x134] ss:$8 sps:$4 sm:$0xff]   ;;  %v2559_v19 = vld [vmem:[%s3835_s1 + $0x24] ss:$8 sps:$4 sm:$0xff]   ;;  %v2558_v20 = vld [vmem:[%s3835_s1 + $0x130] ss:$8 sps:$4 sm:$0xff]  }
   0x8   :  { %751 = vmatprep.subr.bf16.mxu0 %v2541_v8  ;;  %791 = vmatpush1.bf16.msra.mxu1 %v2540_v7  ;;  %v2562_v21 = vld [vmem:[%s3835_s1 + $0x124] ss:$8 sps:$4 sm:$0xff]   ;;  %v2561_v22 = vld [vmem:[%s3835_s1 + $0x20] ss:$8 sps:$4 sm:$0xff]   ;;  %v2565_v23 = vld [vmem:[%s3835_s1 + $0x14] ss:$8 sps:$4 sm:$0xff]  }
   0x9   :  { %792 = vmatprep.subr.bf16.mxu1 %v2544_v10  ;;  %v2564_v24 = vld [vmem:[%s3835_s1 + $0x120] ss:$8 sps:$4 sm:$0xff]   ;;  %v2568_v25 = vld [vmem:[%s3835_s1 + $0x114] ss:$8 sps:$4 sm:$0xff]   ;;  %v2567_v26 = vld [vmem:[%s3835_s1 + $0x10] ss:$8 sps:$4 sm:$0xff]  }
   0xa   :  { %v2571_v27 = vld [vmem:[%s3835_s1 + $0x4] ss:$8 sps:$4 sm:$0xff]   ;;  %v2570_v28 = vld [vmem:[%s3835_s1 + $0x110] ss:$8 sps:$4 sm:$0xff]   ;;  %v2573_v30 = vld [vmem:[%s3835_s1] ss:$8 sps:$4 sm:$0xff]  }
   0xb   :  { %752 = vmatpush1.bf16.msra.mxu0 %v2543_v9  ;;  %v2574_v29 = vld [vmem:[%s3835_s1 + $0x104] ss:$8 sps:$4 sm:$0xff]   ;;  %v2577_v31 = vld [vmem:[%s3835_s1 + $0xf4] ss:$8 sps:$4 sm:$0xff]   ;;  %v2576_v32 = vld [vmem:[%s3835_s1 + $0x100] ss:$8 sps:$4 sm:$0xff]  }
   0xc   :  { %753 = vmatprep.subr.bf16.mxu0 %v2547_v11  ;;  %793 = vmatpush1.bf16.msra.mxu1 %v2546_v12  ;;  %v2580_v33 = vld [vmem:[%s3835_s1 + $0x1f4] ss:$8 sps:$4 sm:$0xff]   ;;  %v2579_v34 = vld [vmem:[%s3835_s1 + $0xf0] ss:$8 sps:$4 sm:$0xff]   ;;  %v2583_v35 = vld [vmem:[%s3835_s1 + $0xe4] ss:$8 sps:$4 sm:$0xff]  }
   0xd   :  { %794 = vmatprep.subr.bf16.mxu1 %v2550_v13  ;;  %v2582_v36 = vld [vmem:[%s3835_s1 + $0x1f0] ss:$8 sps:$4 sm:$0xff]   ;;  %v2586_v37 = vld [vmem:[%s3835_s1 + $0x1e4] ss:$8 sps:$4 sm:$0xff]   ;;  %v2585_v38 = vld [vmem:[%s3835_s1 + $0xe0] ss:$8 sps:$4 sm:$0xff]  }
   0xe   :  { %v2589_v39 = vld [vmem:[%s3835_s1 + $0xd4] ss:$8 sps:$4 sm:$0xff]   ;;  %v2588_v40 = vld [vmem:[%s3835_s1 + $0x1e0] ss:$8 sps:$4 sm:$0xff]   ;;  %v2591_v42 = vld [vmem:[%s3835_s1 + $0xd0] ss:$8 sps:$4 sm:$0xff]  }
   0xf   :  { %754 = vmatpush1.bf16.msra.mxu0 %v2549_v14  ;;  %v2592_v41 = vld [vmem:[%s3835_s1 + $0x1d4] ss:$8 sps:$4 sm:$0xff]   ;;  %v2595_v43 = vld [vmem:[%s3835_s1 + $0xc4] ss:$8 sps:$4 sm:$0xff]   ;;  %v2594_v44 = vld [vmem:[%s3835_s1 + $0x1d0] ss:$8 sps:$4 sm:$0xff]  }
  0x10   :  { %755 = vmatprep.subr.bf16.mxu0 %v2553_v15  ;;  %795 = vmatpush1.bf16.msra.mxu1 %v2552_v16  ;;  %v2598_v45 = vld [vmem:[%s3835_s1 + $0x1c4] ss:$8 sps:$4 sm:$0xff]   ;;  %v2597_v47 = vld [vmem:[%s3835_s1 + $0xc0] ss:$8 sps:$4 sm:$0xff]   ;;  %v2601_v49 = vld [vmem:[%s3835_s1 + $0xb4] ss:$8 sps:$4 sm:$0xff]  }
  0x11   :  { %796 = vmatprep.subr.bf16.mxu1 %v2556_v17  ;;  %v34_v46 = vld [vmem:[%s3834_s0] sm:$0xff]  ;;  %v35_v50 = vld [vmem:[%s3834_s0 + $0x8] sm:$0xff]  ;;  %v2604_v53 = vld [vmem:[%s3835_s1 + $0x1b4] ss:$8 sps:$4 sm:$0xff]   ;;  %v2954_v15 = vmov 0  }
  0x12   :  { %v2213_v48 = vcombine.high %v34_v46, %v34_v46  ;;  %v2600_v51 = vld [vmem:[%s3835_s1 + $0x1c0] ss:$8 sps:$4 sm:$0xff]   ;;  %v2215_v52 = vcombine.high %v35_v50, %v35_v50  ;;  %v2603_v54 = vld [vmem:[%s3835_s1 + $0xb0] ss:$8 sps:$4 sm:$0xff]   ;;  %v2607_v55 = vld [vmem:[%s3835_s1 + $0xa4] ss:$8 sps:$4 sm:$0xff]   ;;  %v2212_v5 = vcombine.low %v34_v46, %v34_v46  ;;  %v2214_v8 = vcombine.low %v35_v50, %v35_v50 }
  0x13   :  { %756 = vmatpush1.bf16.msra.mxu0 %v2555_v18  ;;  %v2606_v56 = vld [vmem:[%s3835_s1 + $0x1b0] ss:$8 sps:$4 sm:$0xff]   ;;  %v2610_v57 = vld [vmem:[%s3835_s1 + $0x1a4] ss:$8 sps:$4 sm:$0xff]   ;;  %v2609_v58 = vld [vmem:[%s3835_s1 + $0xa0] ss:$8 sps:$4 sm:$0xff]  }
  0x14   :  { %757 = vmatprep.subr.bf16.mxu0 %v2559_v19  ;;  %797 = vmatpush1.bf16.msra.mxu1 %v2558_v20  ;;  %v2613_v59 = vld [vmem:[%s3835_s1 + $0x94] ss:$8 sps:$4 sm:$0xff]   ;;  %v2612_v60 = vld [vmem:[%s3835_s1 + $0x1a0] ss:$8 sps:$4 sm:$0xff]   ;;  %v2615_v62 = vld [vmem:[%s3835_s1 + $0x90] ss:$8 sps:$4 sm:$0xff]  }
  0x15   :  { %798 = vmatprep.subr.bf16.mxu1 %v2562_v21  ;;  %779 = vmatprep.mubr.bf16.mxu0 %v2213_v48  ;;  %v2616_v61 = vld [vmem:[%s3835_s1 + $0x194] ss:$8 sps:$4 sm:$0xff]   ;;  %v2619_v63 = vld [vmem:[%s3835_s1 + $0x84] ss:$8 sps:$4 sm:$0xff]   ;;  %v2618_v0 = vld [vmem:[%s3835_s1 + $0x190] ss:$8 sps:$4 sm:$0xff]  }
  0x16   :  { %820 = vmatprep.mubr.bf16.mxu1 %v2215_v52  ;;  %v2622_v1 = vld [vmem:[%s3835_s1 + $0x184] ss:$8 sps:$4 sm:$0xff]   ;;  %v2621_v2 = vld [vmem:[%s3835_s1 + $0x80] ss:$8 sps:$4 sm:$0xff]   ;;  %v2629_v3 = vld [vmem:[%s3835_s1 + $0x274] ss:$8 sps:$4 sm:$0xff]  }
  0x17   :  { %758 = vmatpush1.bf16.msra.mxu0 %v2561_v22  ;;  %v2626_v4 = vld [vmem:[%s3835_s1 + $0x180] ss:$8 sps:$4 sm:$0xff]   ;;  %v2655_v6 = vld [vmem:[%s3835_s1 + $0x374] ss:$8 sps:$4 sm:$0xff]   ;;  %v2627_v7 = vld [vmem:[%s3835_s1 + $0x270] ss:$8 sps:$4 sm:$0xff]  }
  0x18   :  { %759 = vmatprep.subr.bf16.mxu0 %v2565_v23  ;;  %799 = vmatpush1.bf16.msra.mxu1 %v2564_v24  ;;  %v2634_v9 = vld [vmem:[%s3835_s1 + $0x264] ss:$8 sps:$4 sm:$0xff]   ;;  %v2653_v10 = vld [vmem:[%s3835_s1 + $0x370] ss:$8 sps:$4 sm:$0xff]   ;;  %v2632_v12 = vld [vmem:[%s3835_s1 + $0x260] ss:$8 sps:$4 sm:$0xff]  }
  0x19   :  { %800 = vmatprep.subr.bf16.mxu1 %v2568_v25  ;;  %v2661_v11 = vld [vmem:[%s3835_s1 + $0x364] ss:$8 sps:$4 sm:$0xff]   ;;  %v2637_v13 = vld [vmem:[%s3835_s1 + $0x254] ss:$8 sps:$4 sm:$0xff]   ;;  %v2659_v14 = vld [vmem:[%s3835_s1 + $0x360] ss:$8 sps:$4 sm:$0xff]  }
  0x1a   :  { %v2667_v16 = vld [vmem:[%s3835_s1 + $0x354] ss:$8 sps:$4 sm:$0xff]   ;;  %v2635_v17 = vld [vmem:[%s3835_s1 + $0x250] ss:$8 sps:$4 sm:$0xff]   ;;  %v2640_v18 = vld [vmem:[%s3835_s1 + $0x244] ss:$8 sps:$4 sm:$0xff]  }
  0x1b   :  { %760 = vmatpush1.bf16.msra.mxu0 %v2567_v26  ;;  %v2638_v19 = vld [vmem:[%s3835_s1 + $0x240] ss:$8 sps:$4 sm:$0xff]   ;;  %v2665_v20 = vld [vmem:[%s3835_s1 + $0x350] ss:$8 sps:$4 sm:$0xff]   ;;  %v2673_v21 = vld [vmem:[%s3835_s1 + $0x344] ss:$8 sps:$4 sm:$0xff]  }
  0x1c   :  { %761 = vmatprep.subr.bf16.mxu0 %v2571_v27  ;;  %801 = vmatpush1.bf16.msra.mxu1 %v2570_v28  ;;  %v2643_v22 = vld [vmem:[%s3835_s1 + $0x234] ss:$8 sps:$4 sm:$0xff]   ;;  %v2671_v23 = vld [vmem:[%s3835_s1 + $0x340] ss:$8 sps:$4 sm:$0xff]   ;;  %v2641_v26 = vld [vmem:[%s3835_s1 + $0x230] ss:$8 sps:$4 sm:$0xff]  }
  0x1d   :  { %802 = vmatprep.subr.bf16.mxu1 %v2574_v29  ;;  %v2679_v24 = vld [vmem:[%s3835_s1 + $0x334] ss:$8 sps:$4 sm:$0xff]   ;;  %v2646_v28 = vld [vmem:[%s3835_s1 + $0x224] ss:$8 sps:$4 sm:$0xff]   ;;  %v2677_v29 = vld [vmem:[%s3835_s1 + $0x330] ss:$8 sps:$4 sm:$0xff]  }
  0x1e   :  { %v3262_v25 = vld [vmem:[%s3834_s0 + $0x10] sm:$0xff]  ;;  %v2676_v48 = vld [vmem:[%s3835_s1 + $0x2c4] ss:$8 sps:$4 sm:$0xff]  }
  0x1f   :  { %762 = vmatpush1.bf16.msra.mxu0 %v2573_v30  ;;  %v2217_v27 = vcombine.high %v3262_v25, %v3262_v25  ;;  %v2685_v30 = vld [vmem:[%s3835_s1 + $0x324] ss:$8 sps:$4 sm:$0xff]   ;;  %v2670_v46 = vld [vmem:[%s3835_s1 + $0x2d4] ss:$8 sps:$4 sm:$0xff]  }
  0x20   :  { %763 = vmatprep.subr.bf16.mxu0 %v2577_v31  ;;  %803 = vmatpush1.bf16.msra.mxu1 %v2576_v32  ;;  %v2644_v31 = vld [vmem:[%s3835_s1 + $0x220] ss:$8 sps:$4 sm:$0xff]   ;;  %v2649_v32 = vld [vmem:[%s3835_s1 + $0x214] ss:$8 sps:$4 sm:$0xff]   ;;  %v2688_v52 = vld [vmem:[%s3835_s1 + $0x2a4] ss:$8 sps:$4 sm:$0xff]  }
  0x21   :  { %804 = vmatprep.subr.bf16.mxu1 %v2580_v33  ;;  %v2683_v33 = vld [vmem:[%s3835_s1 + $0x320] ss:$8 sps:$4 sm:$0xff]   ;;  %v2682_v50 = vld [vmem:[%s3835_s1 + $0x2b4] ss:$8 sps:$4 sm:$0xff]  }
  0x23   :  { %764 = vmatpush2.bf16.msra.mxu0 %v2579_v34  ;;  %v2691_v34 = vld [vmem:[%s3835_s1 + $0x314] ss:$8 sps:$4 sm:$0xff]  }
  0x24   :  { %765 = vmatprep.subr.bf16.mxu0 %v2583_v35  ;;  %805 = vmatpush2.bf16.msra.mxu1 %v2582_v36  ;;  %v2647_v35 = vld [vmem:[%s3835_s1 + $0x210] ss:$8 sps:$4 sm:$0xff]   ;;  %v2652_v36 = vld [vmem:[%s3835_s1 + $0x204] ss:$8 sps:$4 sm:$0xff]  }
  0x25   :  { %806 = vmatprep.subr.bf16.mxu1 %v2586_v37  ;;  %v2689_v37 = vld [vmem:[%s3835_s1 + $0x310] ss:$8 sps:$4 sm:$0xff]  }
  0x27   :  { %766 = vmatpush2.bf16.msra.mxu0 %v2585_v38  ;;  %v2697_v38 = vld [vmem:[%s3835_s1 + $0x304] ss:$8 sps:$4 sm:$0xff]  }
  0x28   :  { %767 = vmatprep.subr.bf16.mxu0 %v2589_v39  ;;  %807 = vmatpush2.bf16.msra.mxu1 %v2588_v40  ;;  %v2650_v39 = vld [vmem:[%s3835_s1 + $0x200] ss:$8 sps:$4 sm:$0xff]   ;;  %v2658_v40 = vld [vmem:[%s3835_s1 + $0x2f4] ss:$8 sps:$4 sm:$0xff]  }
  0x29   :  { %808 = vmatprep.subr.bf16.mxu1 %v2592_v41  ;;  %v2695_v41 = vld [vmem:[%s3835_s1 + $0x300] ss:$8 sps:$4 sm:$0xff]  }
  0x2b   :  { %768 = vmatpush2.bf16.msra.mxu0 %v2591_v42  ;;  %v2656_v42 = vld [vmem:[%s3835_s1 + $0x2f0] ss:$8 sps:$4 sm:$0xff]  }
  0x2c   :  { %769 = vmatprep.subr.bf16.mxu0 %v2595_v43  ;;  %809 = vmatpush2.bf16.msra.mxu1 %v2594_v44  ;;  %v2664_v43 = vld [vmem:[%s3835_s1 + $0x2e4] ss:$8 sps:$4 sm:$0xff]   ;;  %v2701_v44 = vld [vmem:[%s3834_s0 + $0x18] ss:$0 sps:$4 sm:$0xff]  }
  0x2d   :  { %810 = vmatprep.subr.bf16.mxu1 %v2598_v45  ;;  %v2662_v45 = vld [vmem:[%s3835_s1 + $0x2e0] ss:$8 sps:$4 sm:$0xff]  }
  0x2f   :  { %770 = vmatpush2.bf16.msra.mxu0 %v2597_v47  ;;  %v2668_v47 = vld [vmem:[%s3835_s1 + $0x2d0] ss:$8 sps:$4 sm:$0xff]  }
  0x30   :  { %771 = vmatprep.subr.bf16.mxu0 %v2601_v49  ;;  %811 = vmatpush2.bf16.msra.mxu1 %v2600_v51  ;;  %v2674_v49 = vld [vmem:[%s3835_s1 + $0x2c0] ss:$8 sps:$4 sm:$0xff]   ;;  %v2680_v51 = vld [vmem:[%s3835_s1 + $0x2b0] ss:$8 sps:$4 sm:$0xff]  }
  0x31   :  { %812 = vmatprep.subr.bf16.mxu1 %v2604_v53  ;;  %v2686_v53 = vld [vmem:[%s3835_s1 + $0x2a0] ss:$8 sps:$4 sm:$0xff]  }
  0x33   :  { %772 = vmatpush2.bf16.msra.mxu0 %v2603_v54  ;;  %v2694_v54 = vld [vmem:[%s3835_s1 + $0x294] ss:$8 sps:$4 sm:$0xff]  }
  0x34   :  { %773 = vmatprep.subr.bf16.mxu0 %v2607_v55  ;;  %813 = vmatpush2.bf16.msra.mxu1 %v2606_v56  ;;  %v2692_v55 = vld [vmem:[%s3835_s1 + $0x290] ss:$8 sps:$4 sm:$0xff]   ;;  %v2700_v56 = vld [vmem:[%s3835_s1 + $0x284] ss:$8 sps:$4 sm:$0xff]  }
  0x35   :  { %814 = vmatprep.subr.bf16.mxu1 %v2610_v57  ;;  %v2698_v57 = vld [vmem:[%s3835_s1 + $0x280] ss:$8 sps:$4 sm:$0xff]  }
  0x37   :  { %774 = vmatpush2.bf16.msra.mxu0 %v2609_v58  ;;  %v2216_v58 = vcombine.low %v3262_v25, %v3262_v25 }
  0x38   :  { %775 = vmatprep.subr.bf16.mxu0 %v2613_v59  ;;  %815 = vmatpush2.bf16.msra.mxu1 %v2612_v60 }
  0x39   :  { %816 = vmatprep.subr.bf16.mxu1 %v2616_v61 }
  0x3b   :  { %776 = vmatpush2.bf16.msra.mxu0 %v2615_v62 }
  0x3c   :  { %777 = vmatprep.subr.bf16.mxu0 %v2619_v63  ;;  %817 = vmatpush2.bf16.msra.mxu1 %v2618_v0 }
  0x3d   :  { %818 = vmatprep.subr.bf16.mxu1 %v2622_v1 }
  0x3f   :  { %778 = vmatpush2.bf16.msra.mxu0 %v2621_v2 }
  0x40   :  { %829 = vmatprep.subr.bf16.mxu0 %v2629_v3  ;;  %819 = vmatpush2.bf16.msra.mxu1 %v2626_v4 }
  0x41   :  { %870 = vmatprep.subr.bf16.mxu1 %v2655_v6 }
  0x42   :  { %780 = vmatmul.mubr.bf16.vlgmr.msra.gmra.mxu0 %v2212_v5 }
  0x43   :  { %830 = vmatpush1.bf16.msra.mxu0 %v2627_v7  ;;  %821 = vmatmul.mubr.bf16.vlgmr.msra.gmra.mxu1 %v2214_v8 }
  0x44   :  { %831 = vmatprep.subr.bf16.mxu0 %v2634_v9  ;;  %871 = vmatpush1.bf16.msra.mxu1 %v2653_v10 }
  0x45   :  { %902 = vmatprep.mubr.bf16.mxu1 %v2954_v15  ;;  %872 = vmatprep.subr.bf16.mxu1 %v2661_v11 }
  0x46   :  { %861 = vmatprep.mubr.bf16.mxu0 %v2217_v27 }
  0x47   :  { %832 = vmatpush1.bf16.msra.mxu0 %v2632_v12 }
  0x48   :  { %833 = vmatprep.subr.bf16.mxu0 %v2637_v13  ;;  %873 = vmatpush1.bf16.msra.mxu1 %v2659_v14 }
  0x49   :  { %874 = vmatprep.subr.bf16.mxu1 %v2667_v16 }
  0x4b   :  { %834 = vmatpush1.bf16.msra.mxu0 %v2635_v17 }
  0x4c   :  { %835 = vmatprep.subr.bf16.mxu0 %v2640_v18  ;;  %875 = vmatpush1.bf16.msra.mxu1 %v2665_v20 }
  0x4d   :  { %876 = vmatprep.subr.bf16.mxu1 %v2673_v21 }
  0x4f   :  { %836 = vmatpush1.bf16.msra.mxu0 %v2638_v19 }
  0x50   :  { %837 = vmatprep.subr.bf16.mxu0 %v2643_v22  ;;  %877 = vmatpush1.bf16.msra.mxu1 %v2671_v23 }
  0x51   :  { %878 = vmatprep.subr.bf16.mxu1 %v2679_v24 }
  0x53   :  { %838 = vmatpush1.bf16.msra.mxu0 %v2641_v26 }
  0x54   :  { %839 = vmatprep.subr.bf16.mxu0 %v2646_v28  ;;  %879 = vmatpush1.bf16.msra.mxu1 %v2677_v29 }
  0x55   :  { %880 = vmatprep.subr.bf16.mxu1 %v2685_v30 }
  0x57   :  { %840 = vmatpush1.bf16.msra.mxu0 %v2644_v31 }
  0x58   :  { %841 = vmatprep.subr.bf16.mxu0 %v2649_v32  ;;  %881 = vmatpush1.bf16.msra.mxu1 %v2683_v33 }
  0x59   :  { %882 = vmatprep.subr.bf16.mxu1 %v2691_v34 }
  0x5b   :  { %842 = vmatpush1.bf16.msra.mxu0 %v2647_v35 }
  0x5c   :  { %843 = vmatprep.subr.bf16.mxu0 %v2652_v36  ;;  %883 = vmatpush1.bf16.msra.mxu1 %v2689_v37 }
  0x5d   :  { %884 = vmatprep.subr.bf16.mxu1 %v2697_v38 }
  0x5f   :  { %844 = vmatpush1.bf16.msra.mxu0 %v2650_v39 }
  0x60   :  { %845 = vmatprep.subr.bf16.mxu0 %v2658_v40  ;;  %885 = vmatpush1.bf16.msra.mxu1 %v2695_v41 }
  0x63   :  { %846 = vmatpush2.bf16.msra.mxu0 %v2656_v42  ;;  %903 = vmatmul.mubr.bf16.vlgmr.msra.gmra.mxu1 %v2701_v44 }
  0x64   :  { %847 = vmatprep.subr.bf16.mxu0 %v2664_v43 }
  0x67   :  { %848 = vmatpush2.bf16.msra.mxu0 %v2662_v45 }
  0x68   :  { %849 = vmatprep.subr.bf16.mxu0 %v2670_v46 }
  0x6b   :  { %850 = vmatpush2.bf16.msra.mxu0 %v2668_v47 }
  0x6c   :  { %851 = vmatprep.subr.bf16.mxu0 %v2676_v48 }
  0x6f   :  { %852 = vmatpush2.bf16.msra.mxu0 %v2674_v49 }
  0x70   :  { %853 = vmatprep.subr.bf16.mxu0 %v2682_v50 }
  0x73   :  { %854 = vmatpush2.bf16.msra.mxu0 %v2680_v51 }
  0x74   :  { %855 = vmatprep.subr.bf16.mxu0 %v2688_v52 }
  0x77   :  { %856 = vmatpush2.bf16.msra.mxu0 %v2686_v53 }
  0x78   :  { %857 = vmatprep.subr.bf16.mxu0 %v2694_v54 }
  0x7b   :  { %858 = vmatpush2.bf16.msra.mxu0 %v2692_v55 }
  0x7c   :  { %859 = vmatprep.subr.bf16.mxu0 %v2700_v56 }
  0x7f   :  { %860 = vmatpush2.bf16.msra.mxu0 %v2698_v57 }
  0x82   :  { %862 = vmatmul.mubr.bf16.vlgmr.msra.gmra.mxu0 %v2216_v58 }
  0x83   :  { %1232 = vmatprep.mubr.bf16.mxu0 %v2954_v15 }
  0x84   :  { %14 = vsyncpa [#allocation3], 0  ;;  %v2704_v59 = vld [vmem:[%s3837_s3 + $0x78] sm:$0xff]   ;;  %v2706_v61 = vld [vmem:[%s3837_s3 + $0x70] sm:$0xff]   ;;  %v152_v35 = vlaneseq }
  0x85   :  { %v2705_v60 = vld [vmem:[%s3837_s3 + $0x38] sm:$0xff]   ;;  %2483 = vmatprep.subr.bf16.mxu1 %v2704_v59  ;;  %v2707_v62 = vld [vmem:[%s3837_s3 + $0x30] sm:$0xff]   ;;  %v2708_v63 = vld [vmem:[%s3837_s3 + $0x68] sm:$0xff]  }
  0x86   :  { %2484 = vmatpush3.bf16.msra.mxu1 %v2705_v60  ;;  %v2709_v0 = vld [vmem:[%s3837_s3 + $0x28] sm:$0xff]   ;;  %v2710_v1 = vld [vmem:[%s3837_s3 + $0x60] sm:$0xff]   ;;  %v2712_v3 = vld [vmem:[%s3837_s3 + $0x58] sm:$0xff]   ;;  %v3446_v36 = vshrl.u32 %v152_v35, 7 }
  0x87   :  { %2485 = vmatprep.subr.bf16.mxu1 %v2706_v61  ;;  %v2711_v2 = vld [vmem:[%s3837_s3 + $0x20] sm:$0xff]   ;;  %v2713_v4 = vld [vmem:[%s3837_s3 + $0x18] sm:$0xff]   ;;  %v2714_v5 = vld [vmem:[%s3837_s3 + $0x50] sm:$0xff]  }
  0x88   :  { %v2715_v6 = vld [vmem:[%s3837_s3 + $0x10] sm:$0xff]   ;;  %v2716_v7 = vld [vmem:[%s3837_s3 + $0x48] sm:$0xff]   ;;  %v2718_v9 = vld [vmem:[%s3837_s3 + $0x40] sm:$0xff]   ;;  %v3449_v37 = vsub.s32 0, %v3446_v36  ;;  %v3455_v39 = vsub.s32 1, %v3446_v36 }
  0x89   :  { %v2717_v8 = vld [vmem:[%s3837_s3 + $0x8] sm:$0xff]   ;;  %v2719_v10 = vld [vmem:[%s3837_s3] sm:$0xff]   ;;  %v2720_v11 = vld [vmem:[%s3839_s5 + $0x70] ss:$8 sps:$4 sm:$0xff]  }
  0x8a   :  { %2486 = vmatpush3.bf16.msra.mxu1 %v2707_v62  ;;  %v2722_v12 = vld [vmem:[%s3839_s5 + $0x74] ss:$8 sps:$4 sm:$0xff]   ;;  %v2725_v13 = vld [vmem:[%s3839_s5 + $0x64] ss:$8 sps:$4 sm:$0xff]   ;;  %v2723_v14 = vld [vmem:[%s3839_s5 + $0x60] ss:$8 sps:$4 sm:$0xff]  }
  0x8b   :  { %2487 = vmatprep.subr.bf16.mxu1 %v2708_v63  ;;  %1200 = vmatprep.subr.bf16.mxu0 %v2722_v12  ;;  %v2728_v15 = vld [vmem:[%s3839_s5 + $0x54] ss:$8 sps:$4 sm:$0xff]   ;;  %v2726_v16 = vld [vmem:[%s3839_s5 + $0x50] ss:$8 sps:$4 sm:$0xff]   ;;  %v2731_v17 = vld [vmem:[%s3839_s5 + $0x44] ss:$8 sps:$4 sm:$0xff]  }
  0x8c   :  { %1201 = vmatpush1.bf16.msra.mxu0 %v2720_v11  ;;  %v2729_v18 = vld [vmem:[%s3839_s5 + $0x40] ss:$8 sps:$4 sm:$0xff]   ;;  %v2734_v19 = vld [vmem:[%s3839_s5 + $0x34] ss:$8 sps:$4 sm:$0xff]   ;;  %v2732_v20 = vld [vmem:[%s3839_s5 + $0x30] ss:$8 sps:$4 sm:$0xff]  }
  0x8d   :  { %1202 = vmatprep.subr.bf16.mxu0 %v2725_v13  ;;  %v2737_v21 = vld [vmem:[%s3839_s5 + $0x24] ss:$8 sps:$4 sm:$0xff]   ;;  %v2735_v22 = vld [vmem:[%s3839_s5 + $0x20] ss:$8 sps:$4 sm:$0xff]   ;;  %v2740_v58 = vld [vmem:[%s3839_s5 + $0x14] ss:$8 sps:$4 sm:$0xff]  }
  0x8e   :  { %2488 = vmatpush3.bf16.msra.mxu1 %v2709_v0  ;;  %v150_v38 = vld [vmem:[%s3836_s2] sm:$0x3]  ;;  %v2738_v59 = vld [vmem:[%s3839_s5 + $0x10] ss:$8 sps:$4 sm:$0xff]   ;;  %v2743_v60 = vld [vmem:[%s3839_s5 + $0x4] ss:$8 sps:$4 sm:$0xff]  }
  0x8f   :  { %2489 = vmatprep.subr.bf16.mxu1 %v2710_v1  ;;  %v155_v40 = vrot.slane %v150_v38, %v3449_v37  ;;  %v159_v41 = vrot.slane %v150_v38, %v3455_v39  ;;  %v2741_v61 = vld [vmem:[%s3839_s5] ss:$8 sps:$4 sm:$0xff]   ;;  %v2749_v0 = vld [vmem:[%s3841_s7 + $0x194] ss:$28 sps:$4 sm:$0xff]   ;;  %v2782_v11 = vld [vmem:[%s3841_s7 + $0x3c] ss:$28 sps:$4 sm:$0xff]  }
  0x90   :  { %1203 = vmatpush1.bf16.msra.mxu0 %v2723_v14  ;;  %v2744_v62 = vld [vmem:[%s3841_s7 + $0x188] ss:$28 sps:$4 sm:$0xff]   ;;  %v2752_v1 = vld [vmem:[%s3841_s7 + $0x154] ss:$28 sps:$4 sm:$0xff]   ;;  %v2786_v14 = vld [vmem:[%s3841_s7] ss:$28 sps:$4 sm:$0xff]  }
  0x91   :  { %1204 = vmatprep.subr.bf16.mxu0 %v2728_v15  ;;  %v2746_v63 = vld [vmem:[%s3841_s7 + $0x18c] ss:$28 sps:$4 sm:$0xff]   ;;  %v2780_v12 = vld [vmem:[%s3841_s7 + $0x38] ss:$28 sps:$4 sm:$0xff]   ;;  %v2788_v13 = vld [vmem:[%s3841_s7 + $0x4] ss:$28 sps:$4 sm:$0xff]  }
  0x92   :  { %2490 = vmatpush3.bf16.msra.mxu1 %v2711_v2  ;;  %v2750_v2 = vld [vmem:[%s3841_s7 + $0x150] ss:$28 sps:$4 sm:$0xff]  }
  0x93   :  { %2491 = vmatprep.subr.bf16.mxu1 %v2712_v3  ;;  %v2758_v3 = vld [vmem:[%s3841_s7 + $0x11c] ss:$28 sps:$4 sm:$0xff]   ;;  %v2794_v15 = vld [vmem:[%s3841_s7 + $0x34c] ss:$28 sps:$4 sm:$0xff]  }
  0x94   :  { %1205 = vmatpush1.bf16.msra.mxu0 %v2726_v16  ;;  %v2792_v16 = vld [vmem:[%s3841_s7 + $0x348] ss:$28 sps:$4 sm:$0xff]   ;;  %v2747_v35 = vld [vmem:[%s3841_s7 + $0x190] ss:$28 sps:$4 sm:$0xff]  }
  0x95   :  { %1206 = vmatprep.subr.bf16.mxu0 %v2731_v17  ;;  %v2800_v17 = vld [vmem:[%s3841_s7 + $0x314] ss:$28 sps:$4 sm:$0xff]  }
  0x96   :  { %2492 = vmatpush3.bf16.msra.mxu1 %v2713_v4  ;;  %v2756_v4 = vld [vmem:[%s3841_s7 + $0x118] ss:$28 sps:$4 sm:$0xff]  }
  0x97   :  { %2493 = vmatprep.subr.bf16.mxu1 %v2714_v5  ;;  %v2764_v5 = vld [vmem:[%s3841_s7 + $0xe4] ss:$28 sps:$4 sm:$0xff]  }
  0x98   :  { %1207 = vmatpush1.bf16.msra.mxu0 %v2729_v18  ;;  %v2798_v18 = vld [vmem:[%s3841_s7 + $0x310] ss:$28 sps:$4 sm:$0xff]  }
  0x99   :  { %1208 = vmatprep.subr.bf16.mxu0 %v2734_v19  ;;  %v2806_v19 = vld [vmem:[%s3841_s7 + $0x2dc] ss:$28 sps:$4 sm:$0xff]  }
  0x9a   :  { %2494 = vmatpush3.bf16.msra.mxu1 %v2715_v6  ;;  %v2762_v6 = vld [vmem:[%s3841_s7 + $0xe0] ss:$28 sps:$4 sm:$0xff]  }
  0x9b   :  { %2495 = vmatprep.subr.bf16.mxu1 %v2716_v7  ;;  %v2770_v7 = vld [vmem:[%s3841_s7 + $0xac] ss:$28 sps:$4 sm:$0xff]  }
  0x9c   :  { %1209 = vmatpush1.bf16.msra.mxu0 %v2732_v20  ;;  %v2804_v20 = vld [vmem:[%s3841_s7 + $0x2d8] ss:$28 sps:$4 sm:$0xff]  }
  0x9d   :  { %1210 = vmatprep.subr.bf16.mxu0 %v2737_v21  ;;  %v2812_v21 = vld [vmem:[%s3841_s7 + $0x2a4] ss:$28 sps:$4 sm:$0xff]  }
  0x9e   :  { %2496 = vmatpush3.bf16.msra.mxu1 %v2717_v8  ;;  %v2768_v8 = vld [vmem:[%s3841_s7 + $0xa8] ss:$28 sps:$4 sm:$0xff]  }
  0x9f   :  { %2497 = vmatprep.subr.bf16.mxu1 %v2718_v9  ;;  %v2776_v9 = vld [vmem:[%s3841_s7 + $0x74] ss:$28 sps:$4 sm:$0xff]  }
  0xa0   :  { %1211 = vmatpush1.bf16.msra.mxu0 %v2735_v22  ;;  %v2810_v22 = vld [vmem:[%s3841_s7 + $0x2a0] ss:$28 sps:$4 sm:$0xff]  }
  0xa1   :  { %1212 = vmatprep.subr.bf16.mxu0 %v2740_v58  ;;  %v2809_v58 = vld [vmem:[%s3841_s7 + $0x2e4] ss:$28 sps:$4 sm:$0xff]  }
  0xa2   :  { %2498 = vmatpush3.bf16.msra.mxu1 %v2719_v10  ;;  %v2774_v10 = vld [vmem:[%s3841_s7 + $0x70] ss:$28 sps:$4 sm:$0xff]  }
  0xa3   :  { %1986 = vmatprep.subr.bf16.mxu1 %v2746_v63  ;;  %v2819_v63 = vld [vmem:[%s3841_s7 + $0x270] ss:$28 sps:$4 sm:$0xff]  }
  0xa4   :  { %1213 = vmatpush1.bf16.msra.mxu0 %v2738_v59  ;;  %v2807_v59 = vld [vmem:[%s3841_s7 + $0x2e0] ss:$28 sps:$4 sm:$0xff]  }
  0xa5   :  { %1214 = vmatprep.subr.bf16.mxu0 %v2743_v60  ;;  %v2815_v60 = vld [vmem:[%s3841_s7 + $0x2ac] ss:$28 sps:$4 sm:$0xff]  }
  0xa8   :  { %1215 = vmatpush1.bf16.msra.mxu0 %v2741_v61  ;;  %v2813_v61 = vld [vmem:[%s3841_s7 + $0x2a8] ss:$28 sps:$4 sm:$0xff]  }
  0xa9   :  { %2027 = vmatprep.subr.bf16.mxu0 %v2749_v0  ;;  %v2827_v0 = vld [vmem:[%s3841_s7 + $0x23c] ss:$28 sps:$4 sm:$0xff]  }
 0x102   :  { %v781_v23 = vpop.f32.mrf.mxu0 }
 0x103   :  { %v822_v25 = vpop.f32.mrf.mxu1  ;;  %v782_v42 = vadd.f32 %v781_v23, %v155_v40  ;;  %v2818_v23 = vld [vmem:[%s3841_s7 + $0x26c] ss:$28 sps:$4 sm:$0xff]   ;;  %v2755_v40 = vld [vmem:[%s3841_s7 + $0x15c] ss:$28 sps:$4 sm:$0xff]  }
 0x104   :  { %v783_v24 = vpop.f32.mrf.mxu0 }
 0x105   :  { %v824_v27 = vpop.f32.mrf.mxu1  ;;  %v784_v43 = vadd.f32 %v783_v24, %v159_v41  ;;  %v823_v44 = vadd.f32 %v822_v25, %v782_v42  ;;  %v2816_v24 = vld [vmem:[%s3841_s7 + $0x268] ss:$28 sps:$4 sm:$0xff]   ;;  %v2824_v25 = vld [vmem:[%s3841_s7 + $0x234] ss:$28 sps:$4 sm:$0xff]  }
 0x106   :  { %v785_v26 = vpop.f32.mrf.mxu0  ;;  %v2753_v41 = vld [vmem:[%s3841_s7 + $0x158] ss:$28 sps:$4 sm:$0xff]   ;;  %v2761_v42 = vld [vmem:[%s3841_s7 + $0x124] ss:$28 sps:$4 sm:$0xff]  }
 0x107   :  { %v826_v29 = vpop.f32.mrf.mxu1  ;;  %v825_v46 = vadd.f32 %v824_v27, %v784_v43  ;;  %v2822_v26 = vld [vmem:[%s3841_s7 + $0x230] ss:$28 sps:$4 sm:$0xff]   ;;  %v2759_v43 = vld [vmem:[%s3841_s7 + $0x120] ss:$28 sps:$4 sm:$0xff]  }
 0x108   :  { %v786_v28 = vpop.f32.mrf.mxu0 }
 0x109   :  { %v827_v30 = vpop.f32.mrf.mxu1  ;;  %v2331_v28 = vld [vmem:[%s3838_s4] ss:$0 sm:$0xff] }
 0x123   :  { %v904_v31 = vpop.f32.mrf.mxu1 }
 0x125   :  { %v906_v32 = vpop.f32.mrf.mxu1 }
 0x127   :  { %v908_v33 = vpop.f32.mrf.mxu1 }
 0x129   :  { %v909_v34 = vpop.f32.mrf.mxu1 }
 0x142   :  { %v863_v45 = vpop.f32.mrf.mxu0 }
 0x143   :  { %v864_v47 = vadd.f32 %v863_v45, %v823_v44  ;;  %v2767_v44 = vld [vmem:[%s3841_s7 + $0xec] ss:$28 sps:$4 sm:$0xff]  }
 0x144   :  { %v865_v48 = vpop.f32.mrf.mxu0  ;;  %v2765_v45 = vld [vmem:[%s3841_s7 + $0xe8] ss:$28 sps:$4 sm:$0xff]  }
 0x145   :  { %v905_v49 = vadd.f32 %v904_v31, %v864_v47  ;;  %v866_v50 = vadd.f32 %v865_v48, %v825_v46  ;;  %v2773_v46 = vld [vmem:[%s3841_s7 + $0xb4] ss:$28 sps:$4 sm:$0xff]   ;;  %v2779_v48 = vld [vmem:[%s3841_s7 + $0x7c] ss:$28 sps:$4 sm:$0xff]  }
 0x146   :  { %v867_v51 = vpop.f32.mrf.mxu0  ;;  %v2771_v47 = vld [vmem:[%s3841_s7 + $0xb0] ss:$28 sps:$4 sm:$0xff]  }
 0x147   :  { %v907_v52 = vadd.f32 %v906_v32, %v866_v50  ;;  %v911_v53 = vmax.f32 %v905_v49, 0.0  ;;  %v2777_v49 = vld [vmem:[%s3841_s7 + $0x78] ss:$28 sps:$4 sm:$0xff]   ;;  %v2785_v50 = vld [vmem:[%s3841_s7 + $0x44] ss:$28 sps:$4 sm:$0xff]  }
 0x148   :  { %v868_v54 = vpop.f32.mrf.mxu0  ;;  %v2783_v51 = vld [vmem:[%s3841_s7 + $0x40] ss:$28 sps:$4 sm:$0xff]  }
 0x149   :  { %v912_v55 = vmax.f32 %v907_v52, 0.0  ;;  %v913_v57 = vpack.c.bf16 %v911_v53, %v911_v53  ;;  %v2791_v52 = vld [vmem:[%s3841_s7 + $0xc] ss:$28 sps:$4 sm:$0xff]   ;;  %v2797_v54 = vld [vmem:[%s3841_s7 + $0x354] ss:$28 sps:$4 sm:$0xff]  }
 0x14a   :  { %v2789_v53 = vld [vmem:[%s3841_s7 + $0x8] ss:$28 sps:$4 sm:$0xff]  }
 0x14b   :  { %v914_v56 = vpack.c.bf16 %v912_v55, %v912_v55  ;;  %v2795_v55 = vld [vmem:[%s3841_s7 + $0x350] ss:$28 sps:$4 sm:$0xff]  }
 0x14d   :  { %1082 = vmatprep.mubr.bf16.mxu1 %v914_v56  ;;  %v2803_v56 = vld [vmem:[%s3841_s7 + $0x31c] ss:$28 sps:$4 sm:$0xff]  }
 0x14e   :  { %1083 = vmatmul.mubr.bf16.vlgmr.msra.gmra.mxu1 %v913_v57  ;;  %v2801_v57 = vld [vmem:[%s3841_s7 + $0x318] ss:$28 sps:$4 sm:$0xff]  }
 0x14f   :  { %1987 = vmatpush1.bf16.msra.mxu1 %v2744_v62  ;;  %v2821_v62 = vld [vmem:[%s3841_s7 + $0x274] ss:$28 sps:$4 sm:$0xff]  }
 0x150   :  { %1988 = vmatprep.subr.bf16.mxu1 %v2752_v1  ;;  %v2825_v1 = vld [vmem:[%s3841_s7 + $0x238] ss:$28 sps:$4 sm:$0xff]  }
 0x153   :  { %1989 = vmatpush1.bf16.msra.mxu1 %v2750_v2  ;;  %v2830_v2 = vld [vmem:[%s3841_s7 + $0x1fc] ss:$28 sps:$4 sm:$0xff]  }
 0x154   :  { %1990 = vmatprep.subr.bf16.mxu1 %v2758_v3  ;;  %v2833_v3 = vld [vmem:[%s3841_s7 + $0x204] ss:$28 sps:$4 sm:$0xff]  }
 0x157   :  { %1991 = vmatpush1.bf16.msra.mxu1 %v2756_v4  ;;  %v2828_v4 = vld [vmem:[%s3841_s7 + $0x1f8] ss:$28 sps:$4 sm:$0xff]  }
 0x158   :  { %1992 = vmatprep.subr.bf16.mxu1 %v2764_v5  ;;  %v2831_v5 = vld [vmem:[%s3841_s7 + $0x200] ss:$28 sps:$4 sm:$0xff]  }
 0x15b   :  { %1993 = vmatpush1.bf16.msra.mxu1 %v2762_v6  ;;  %v2836_v6 = vld [vmem:[%s3841_s7 + $0x1c4] ss:$28 sps:$4 sm:$0xff]  }
 0x15c   :  { %1994 = vmatprep.subr.bf16.mxu1 %v2770_v7  ;;  %v2839_v7 = vld [vmem:[%s3841_s7 + $0x1cc] ss:$28 sps:$4 sm:$0xff]  }
 0x15f   :  { %1995 = vmatpush1.bf16.msra.mxu1 %v2768_v8  ;;  %v2834_v8 = vld [vmem:[%s3841_s7 + $0x1c0] ss:$28 sps:$4 sm:$0xff]  }
 0x160   :  { %1996 = vmatprep.subr.bf16.mxu1 %v2776_v9  ;;  %v2837_v9 = vld [vmem:[%s3841_s7 + $0x1c8] ss:$28 sps:$4 sm:$0xff]  }
 0x163   :  { %1997 = vmatpush1.bf16.msra.mxu1 %v2774_v10  ;;  %v2842_v10 = vld [vmem:[%s3841_s7 + $0x19c] ss:$28 sps:$4 sm:$0xff]  }
 0x164   :  { %1998 = vmatprep.subr.bf16.mxu1 %v2782_v11  ;;  %v2843_v11 = vld [vmem:[%s3841_s7 + $0x360] ss:$28 sps:$4 sm:$0xff]  }
 0x167   :  { %1999 = vmatpush1.bf16.msra.mxu1 %v2780_v12  ;;  %v1108_v12 = vld [vmem:[%s3840_s6] sm:$0x3] }
 0x168   :  { %2000 = vmatprep.subr.bf16.mxu1 %v2788_v13  ;;  %v1113_v13 = vrot.slane %v1108_v12, %v3449_v37 }
 0x16b   :  { %2001 = vmatpush1.bf16.msra.mxu1 %v2786_v14  ;;  %v1117_v14 = vrot.slane %v1108_v12, %v3455_v39  ;;  %v1389_v12 = vsub.s32 3, %v3446_v36 }
 0x16c   :  { %2002 = vmatprep.subr.bf16.mxu1 %v2794_v15 }
 0x16f   :  { %2003 = vmatpush2.bf16.msra.mxu1 %v2792_v16 }
 0x170   :  { %2004 = vmatprep.subr.bf16.mxu1 %v2800_v17 }
 0x173   :  { %2005 = vmatpush2.bf16.msra.mxu1 %v2798_v18 }
 0x174   :  { %2006 = vmatprep.subr.bf16.mxu1 %v2806_v19 }
 0x177   :  { %2007 = vmatpush2.bf16.msra.mxu1 %v2804_v20 }
 0x178   :  { %2008 = vmatprep.subr.bf16.mxu1 %v2812_v21 }
 0x17b   :  { %2009 = vmatpush2.bf16.msra.mxu1 %v2810_v22 }
 0x17c   :  { %2010 = vmatprep.subr.bf16.mxu1 %v2818_v23 }
 0x17f   :  { %2011 = vmatpush2.bf16.msra.mxu1 %v2816_v24  ;;  %v2840_v24 = vld [vmem:[%s3841_s7 + $0x198] ss:$28 sps:$4 sm:$0xff]  }
 0x180   :  { %2012 = vmatprep.subr.bf16.mxu1 %v2824_v25  ;;  %v2844_v25 = vld [vmem:[%s3841_s7 + $0x1a0] ss:$28 sps:$4 sm:$0xff]  }
 0x183   :  { %2013 = vmatpush2.bf16.msra.mxu1 %v2822_v26 }
 0x184   :  { %2014 = vmatprep.subr.bf16.mxu1 %v2830_v2  ;;  %v2894_v2 = vld [vmem:[%s3841_s7 + $0x27c] ss:$28 sps:$4 sm:$0xff]  }
 0x187   :  { %2015 = vmatpush2.bf16.msra.mxu1 %v2828_v4  ;;  %v2897_v4 = vld [vmem:[%s3841_s7 + $0x244] ss:$28 sps:$4 sm:$0xff]  }
 0x188   :  { %2016 = vmatprep.subr.bf16.mxu1 %v2836_v6  ;;  %v2900_v6 = vld [vmem:[%s3841_s7 + $0x20c] ss:$28 sps:$4 sm:$0xff]  }
 0x18b   :  { %2017 = vmatpush2.bf16.msra.mxu1 %v2834_v8  ;;  %v2903_v8 = vld [vmem:[%s3841_s7 + $0x1d4] ss:$28 sps:$4 sm:$0xff]  }
 0x18c   :  { %2068 = vmatprep.subr.bf16.mxu1 %v2842_v10  ;;  %v1385_v10 = vsub.s32 2, %v3446_v36 }
 0x20e   :  { %v2499_v27 = vpop.f32.mrf.mxu1 }
 0x210   :  { %v2500_v29 = vpop.f32.mrf.mxu1 }
 0x211   :  { %v2501_v30 = vadd.f32 %v2500_v29, %v2499_v27  ;;  %v2847_v27 = vld [vmem:[%s3841_s7 + $0x164] ss:$28 sps:$4 sm:$0xff]  }
 0x212   :  { %v2502_v31 = vpop.f32.mrf.mxu1  ;;  %v2845_v29 = vld [vmem:[%s3841_s7 + $0x160] ss:$28 sps:$4 sm:$0xff]  }
 0x213   :  { %v1085_v32 = vadd.f32 %v2501_v30, %v2331_v28  ;;  %v2848_v28 = vld [vmem:[%s3841_s7 + $0x328] ss:$28 sps:$4 sm:$0xff]  }
 0x214   :  { %v2503_v33 = vpop.f32.mrf.mxu1  ;;  %v2849_v30 = vld [vmem:[%s3841_s7 + $0x168] ss:$28 sps:$4 sm:$0xff]  }
 0x215   :  { %v1090_v34 = vmax.f32 %v1085_v32, 0.0  ;;  %v2852_v31 = vld [vmem:[%s3841_s7 + $0x12c] ss:$28 sps:$4 sm:$0xff]  }
 0x216   :  { %v2853_v32 = vld [vmem:[%s3841_s7 + $0x2f0] ss:$28 sps:$4 sm:$0xff]   ;;  %v2850_v33 = vld [vmem:[%s3841_s7 + $0x128] ss:$28 sps:$4 sm:$0xff]  }
 0x217   :  { %v1091_v38 = vpack.c.bf16 %v1090_v34, %v1090_v34  ;;  %v2854_v34 = vld [vmem:[%s3841_s7 + $0x130] ss:$28 sps:$4 sm:$0xff]  }
 0x219   :  { %1233 = vmatmul.mubr.bf16.vlgmr.msra.gmra.mxu0 %v1091_v38  ;;  %v2858_v38 = vld [vmem:[%s3841_s7 + $0x2b8] ss:$28 sps:$4 sm:$0xff]  }
 0x21a   :  { %2028 = vmatpush1.bf16.msra.mxu0 %v2747_v35  ;;  %v2857_v35 = vld [vmem:[%s3841_s7 + $0xf4] ss:$28 sps:$4 sm:$0xff]  }
 0x21b   :  { %2029 = vmatprep.subr.bf16.mxu0 %v2755_v40  ;;  %v2855_v40 = vld [vmem:[%s3841_s7 + $0xf0] ss:$28 sps:$4 sm:$0xff]  }
 0x21e   :  { %2030 = vmatpush1.bf16.msra.mxu0 %v2753_v41  ;;  %v2859_v41 = vld [vmem:[%s3841_s7 + $0xf8] ss:$28 sps:$4 sm:$0xff]  }
 0x21f   :  { %2031 = vmatprep.subr.bf16.mxu0 %v2761_v42  ;;  %v2862_v42 = vld [vmem:[%s3841_s7 + $0xbc] ss:$28 sps:$4 sm:$0xff]  }
 0x222   :  { %2032 = vmatpush1.bf16.msra.mxu0 %v2759_v43  ;;  %v2863_v43 = vld [vmem:[%s3841_s7 + $0x280] ss:$28 sps:$4 sm:$0xff]  }
 0x223   :  { %2033 = vmatprep.subr.bf16.mxu0 %v2767_v44  ;;  %v2860_v44 = vld [vmem:[%s3841_s7 + $0xb8] ss:$28 sps:$4 sm:$0xff]  }
 0x226   :  { %2034 = vmatpush1.bf16.msra.mxu0 %v2765_v45  ;;  %v2864_v45 = vld [vmem:[%s3841_s7 + $0xc0] ss:$28 sps:$4 sm:$0xff]  }
 0x227   :  { %2035 = vmatprep.subr.bf16.mxu0 %v2773_v46  ;;  %v2867_v46 = vld [vmem:[%s3841_s7 + $0x84] ss:$28 sps:$4 sm:$0xff]  }
 0x22a   :  { %2036 = vmatpush1.bf16.msra.mxu0 %v2771_v47  ;;  %v2868_v47 = vld [vmem:[%s3841_s7 + $0x248] ss:$28 sps:$4 sm:$0xff]  }
 0x22b   :  { %2037 = vmatprep.subr.bf16.mxu0 %v2779_v48  ;;  %v2865_v48 = vld [vmem:[%s3841_s7 + $0x80] ss:$28 sps:$4 sm:$0xff]  }
 0x22e   :  { %2038 = vmatpush1.bf16.msra.mxu0 %v2777_v49  ;;  %v2869_v49 = vld [vmem:[%s3841_s7 + $0x88] ss:$28 sps:$4 sm:$0xff]  }
 0x22f   :  { %2039 = vmatprep.subr.bf16.mxu0 %v2785_v50  ;;  %v2872_v50 = vld [vmem:[%s3841_s7 + $0x4c] ss:$28 sps:$4 sm:$0xff]  }
 0x232   :  { %2040 = vmatpush1.bf16.msra.mxu0 %v2783_v51  ;;  %v2873_v51 = vld [vmem:[%s3841_s7 + $0x210] ss:$28 sps:$4 sm:$0xff]  }
 0x233   :  { %2041 = vmatprep.subr.bf16.mxu0 %v2791_v52  ;;  %v2870_v52 = vld [vmem:[%s3841_s7 + $0x48] ss:$28 sps:$4 sm:$0xff]  }
 0x236   :  { %2042 = vmatpush1.bf16.msra.mxu0 %v2789_v53  ;;  %v2874_v53 = vld [vmem:[%s3841_s7 + $0x50] ss:$28 sps:$4 sm:$0xff]  }
 0x237   :  { %2043 = vmatprep.subr.bf16.mxu0 %v2797_v54  ;;  %v2877_v54 = vld [vmem:[%s3841_s7 + $0x14] ss:$28 sps:$4 sm:$0xff]  }
 0x23a   :  { %2044 = vmatpush2.bf16.msra.mxu0 %v2795_v55  ;;  %v2878_v55 = vld [vmem:[%s3841_s7 + $0x1d8] ss:$28 sps:$4 sm:$0xff]  }
 0x23b   :  { %2045 = vmatprep.subr.bf16.mxu0 %v2803_v56  ;;  %v2875_v56 = vld [vmem:[%s3841_s7 + $0x10] ss:$28 sps:$4 sm:$0xff]  }
 0x23e   :  { %2046 = vmatpush2.bf16.msra.mxu0 %v2801_v57  ;;  %v2879_v57 = vld [vmem:[%s3841_s7 + $0x18] ss:$28 sps:$4 sm:$0xff]  }
 0x23f   :  { %2047 = vmatprep.subr.bf16.mxu0 %v2809_v58  ;;  %v2882_v58 = vld [vmem:[%s3841_s7 + $0x35c] ss:$28 sps:$4 sm:$0xff]  }
 0x242   :  { %2048 = vmatpush2.bf16.msra.mxu0 %v2807_v59  ;;  %v2880_v59 = vld [vmem:[%s3841_s7 + $0x358] ss:$28 sps:$4 sm:$0xff]  }
 0x243   :  { %2049 = vmatprep.subr.bf16.mxu0 %v2815_v60  ;;  %v2885_v60 = vld [vmem:[%s3841_s7 + $0x324] ss:$28 sps:$4 sm:$0xff]  }
 0x246   :  { %2050 = vmatpush2.bf16.msra.mxu0 %v2813_v61  ;;  %v2883_v61 = vld [vmem:[%s3841_s7 + $0x320] ss:$28 sps:$4 sm:$0xff]  }
 0x247   :  { %2051 = vmatprep.subr.bf16.mxu0 %v2821_v62  ;;  %v2888_v62 = vld [vmem:[%s3841_s7 + $0x2ec] ss:$28 sps:$4 sm:$0xff]  }
 0x24a   :  { %2052 = vmatpush2.bf16.msra.mxu0 %v2819_v63  ;;  %v2886_v63 = vld [vmem:[%s3841_s7 + $0x2e8] ss:$28 sps:$4 sm:$0xff]  }
 0x24b   :  { %2053 = vmatprep.subr.bf16.mxu0 %v2827_v0  ;;  %v2891_v0 = vld [vmem:[%s3841_s7 + $0x2b4] ss:$28 sps:$4 sm:$0xff]  }
 0x24e   :  { %2054 = vmatpush2.bf16.msra.mxu0 %v2825_v1  ;;  %v2889_v1 = vld [vmem:[%s3841_s7 + $0x2b0] ss:$28 sps:$4 sm:$0xff]  }
 0x24f   :  { %2055 = vmatprep.subr.bf16.mxu0 %v2833_v3  ;;  %v2892_v3 = vld [vmem:[%s3841_s7 + $0x278] ss:$28 sps:$4 sm:$0xff]  }
 0x252   :  { %2056 = vmatpush2.bf16.msra.mxu0 %v2831_v5  ;;  %v2895_v5 = vld [vmem:[%s3841_s7 + $0x240] ss:$28 sps:$4 sm:$0xff]  }
 0x253   :  { %2057 = vmatprep.subr.bf16.mxu0 %v2839_v7  ;;  %v2898_v7 = vld [vmem:[%s3841_s7 + $0x208] ss:$28 sps:$4 sm:$0xff]  }
 0x256   :  { %2058 = vmatpush2.bf16.msra.mxu0 %v2837_v9  ;;  %v2901_v9 = vld [vmem:[%s3841_s7 + $0x1d0] ss:$28 sps:$4 sm:$0xff]   ;;  %s2955_s7 = smov [#allocation2]  }
 0x257   :  { %2505 = vmatprep.subr.bf16.mxu0 %v2843_v11  ;;  %v1373_v11 = vld [vmem:[%s3842_s8] sm:$0xff]  ;;  %s2204_s8 = sshll.u32 %s2955_s7, 4  ;;  %s2205_s8 = int_to_ptr.vmem [resolvable:$true] %s2204_s8 }
 0x258   :  { %s2932_s1 = scalar_lea.vmem %s2205_s8, 896  ;;  %p2937_p1 = scmp.lt.s32.totalorder %s2205_s8, %s2205_s8 }
 0x259   :  { %p2933_p0 = scmp.ne.s32.totalorder %s2205_s8, %s2932_s1  ;;  %p2938_p2 = scmp.lt.s32.totalorder %s2932_s1, %s2932_s1 }
 0x25b   :  { %p2939_p3 = por %p2938_p2, %p2937_p1 }
 0x25d   :  { %p2940_p4 = pnand %p2939_p3, %p2933_p0 }
 0x2d9   :  { %v1234_v15 = vpop.f32.mrf.mxu0 }
 0x2da   :  { %v1235_v16 = vadd.f32 %v1234_v15, %v1113_v13  ;;  %v1378_v13 = vrot.slane %v1373_v11, %v3449_v37  ;;  %v1382_v15 = vrot.slane %v1373_v11, %v3455_v39 }
 0x2db   :  { %v1236_v17 = vpop.f32.mrf.mxu0 }
 0x2dc   :  { %v1237_v18 = vadd.f32 %v1236_v17, %v1117_v14  ;;  %v1241_v19 = vmax.f32 %v1235_v16, 0.0  ;;  %v1386_v14 = vrot.slane %v1373_v11, %v1385_v10  ;;  %v1390_v16 = vrot.slane %v1373_v11, %v1389_v12 }
 0x2dd   :  { %v1238_v20 = vpop.f32.mrf.mxu0 }
 0x2de   :  { %v1242_v21 = vmax.f32 %v1237_v18, 0.0  ;;  %v3683_v26 = vpack.c.bf16 %v1241_v19, %v1241_v19 }
 0x2df   :  { %v1239_v22 = vpop.f32.mrf.mxu0 }
 0x2e0   :  { %v1244_v23 = vpack.c.bf16 %v1242_v21, %v1242_v21 }
 0x2e2   :  { %2018 = vmatprep.mubr.bf16.mxu1 %v1244_v23  ;;  %2059 = vmatprep.mubr.bf16.mxu0 %v1244_v23 }
 0x2e3   :  { %2019 = vmatmul.mubr.bf16.vlgmr.msra.gmra.mxu1 %v3683_v26  ;;  %2060 = vmatmul.mubr.bf16.vlgmr.msra.gmra.mxu0 %v3683_v26 }
 0x2e4   :  { %2069 = vmatpush1.bf16.msra.mxu1 %v2840_v24  ;;  %2506 = vmatpush3.bf16.msra.mxu0 %v2844_v25 }
 0x2e5   :  { %2100 = vmatprep.mubr.bf16.mxu1 %v1244_v23  ;;  %2141 = vmatprep.mubr.bf16.mxu0 %v1244_v23 }
 0x2e6   :  { %2070 = vmatprep.subr.bf16.mxu1 %v2847_v27  ;;  %2507 = vmatprep.subr.bf16.mxu0 %v2848_v28 }
 0x2e8   :  { %2071 = vmatpush1.bf16.msra.mxu1 %v2845_v29  ;;  %2508 = vmatpush3.bf16.msra.mxu0 %v2849_v30 }
 0x2e9   :  { %2072 = vmatprep.subr.bf16.mxu1 %v2852_v31  ;;  %2509 = vmatprep.subr.bf16.mxu0 %v2853_v32 }
 0x2ec   :  { %2073 = vmatpush1.bf16.msra.mxu1 %v2850_v33  ;;  %2510 = vmatpush3.bf16.msra.mxu0 %v2854_v34 }
 0x2ed   :  { %2074 = vmatprep.subr.bf16.mxu1 %v2857_v35  ;;  %2511 = vmatprep.subr.bf16.mxu0 %v2858_v38 }
 0x2f0   :  { %2075 = vmatpush1.bf16.msra.mxu1 %v2855_v40  ;;  %2512 = vmatpush3.bf16.msra.mxu0 %v2859_v41 }
 0x2f1   :  { %2076 = vmatprep.subr.bf16.mxu1 %v2862_v42  ;;  %2513 = vmatprep.subr.bf16.mxu0 %v2863_v43  ;;  %v1401_v42 = vsub.s32 6, %v3446_v36 }
 0x2f4   :  { %2077 = vmatpush1.bf16.msra.mxu1 %v2860_v44  ;;  %2514 = vmatpush3.bf16.msra.mxu0 %v2864_v45  ;;  %v1402_v44 = vrot.slane %v1373_v11, %v1401_v42 }
 0x2f5   :  { %2078 = vmatprep.subr.bf16.mxu1 %v2867_v46  ;;  %2515 = vmatprep.subr.bf16.mxu0 %v2868_v47 }
 0x2f8   :  { %2079 = vmatpush1.bf16.msra.mxu1 %v2865_v48  ;;  %2516 = vmatpush3.bf16.msra.mxu0 %v2869_v49 }
 0x2f9   :  { %2080 = vmatprep.subr.bf16.mxu1 %v2872_v50  ;;  %2517 = vmatprep.subr.bf16.mxu0 %v2873_v51 }
 0x2fc   :  { %2081 = vmatpush1.bf16.msra.mxu1 %v2870_v52  ;;  %2518 = vmatpush3.bf16.msra.mxu0 %v2874_v53 }
 0x2fd   :  { %2082 = vmatprep.subr.bf16.mxu1 %v2877_v54  ;;  %2519 = vmatprep.subr.bf16.mxu0 %v2878_v55 }
 0x300   :  { %2083 = vmatpush1.bf16.msra.mxu1 %v2875_v56  ;;  %2520 = vmatpush3.bf16.msra.mxu0 %v2879_v57  ;;  %v1393_v57 = vsub.s32 4, %v3446_v36 }
 0x301   :  { %2084 = vmatprep.subr.bf16.mxu1 %v2882_v58  ;;  %v1397_v58 = vsub.s32 5, %v3446_v36 }
 0x303   :  { %2142 = vmatmul.mubr.bf16.vlgmr.msra.gmra.mxu0 %v3683_v26 }
 0x304   :  { %2085 = vmatpush2.bf16.msra.mxu1 %v2880_v59  ;;  %v1394_v59 = vrot.slane %v1373_v11, %v1393_v57 }
 0x305   :  { %2086 = vmatprep.subr.bf16.mxu1 %v2885_v60  ;;  %v1398_v60 = vrot.slane %v1373_v11, %v1397_v58 }
 0x308   :  { %2087 = vmatpush2.bf16.msra.mxu1 %v2883_v61 }
 0x309   :  { %2088 = vmatprep.subr.bf16.mxu1 %v2888_v62 }
 0x30c   :  { %2089 = vmatpush2.bf16.msra.mxu1 %v2886_v63 }
 0x30d   :  { %2090 = vmatprep.subr.bf16.mxu1 %v2891_v0 }
 0x310   :  { %2091 = vmatpush2.bf16.msra.mxu1 %v2889_v1 }
 0x311   :  { %2092 = vmatprep.subr.bf16.mxu1 %v2894_v2 }
 0x314   :  { %2093 = vmatpush2.bf16.msra.mxu1 %v2892_v3 }
 0x315   :  { %2094 = vmatprep.subr.bf16.mxu1 %v2897_v4 }
 0x318   :  { %2095 = vmatpush2.bf16.msra.mxu1 %v2895_v5 }
 0x319   :  { %2096 = vmatprep.subr.bf16.mxu1 %v2900_v6 }
 0x31c   :  { %2097 = vmatpush2.bf16.msra.mxu1 %v2898_v7 }
 0x31d   :  { %2098 = vmatprep.subr.bf16.mxu1 %v2903_v8 }
 0x320   :  { %2099 = vmatpush2.bf16.msra.mxu1 %v2901_v9 }
 0x323   :  { %2101 = vmatmul.mubr.bf16.vlgmr.msra.gmra.mxu1 %v3683_v26 }
 0x3a3   :  { %v2020_v17 = vpop.f32.mrf.mxu1  ;;  %v2061_v18 = vpop.f32.mrf.mxu0 }
 0x3a4   :  { %v2021_v19 = vadd.f32 %v2020_v17, %v1378_v13  ;;  %v2062_v20 = vadd.f32 %v2061_v18, %v1386_v14 }
 0x3a5   :  { %v2022_v21 = vpop.f32.mrf.mxu1  ;;  %v2063_v22 = vpop.f32.mrf.mxu0 }
 0x3a6   :  { %v2476_v23 = vmul.f32 -1.442695, %v2021_v19  ;;  %v2478_v24 = vmul.f32 -1.442695, %v2062_v20  ;;  %v2023_v25 = vadd.f32 %v2022_v21, %v1382_v15  ;;  %v2064_v26 = vadd.f32 %v2063_v22, %v1390_v16 }
 0x3a7   :  { %v2024_v27 = vpop.f32.mrf.mxu1  ;;  %v2065_v28 = vpop.f32.mrf.mxu0 }
 0x3a8   :  { %2904 = vpow2.f32 %v2476_v23  ;;  %v2477_v29 = vmul.f32 -1.442695, %v2023_v25  ;;  %v2479_v30 = vmul.f32 -1.442695, %v2064_v26 }
 0x3a9   :  { %2906 = vpow2.f32 %v2478_v24  ;;  %v2025_v37 = vpop.f32.mrf.mxu1  ;;  %v2066_v31 = vpop.f32.mrf.mxu0 }
 0x3aa   :  { %2908 = vpow2.f32 %v2477_v29 }
 0x3ab   :  { %2910 = vpow2.f32 %v2479_v30 }
 0x3b5   :  { %v2905_v39 = vpop.eup %2904 }
 0x3b6   :  { %v2907_v32 = vpop.eup %2906  ;;  %v2170_v33 = vadd.f32 1.0, %v2905_v39 }
 0x3b7   :  { %v2909_v34 = vpop.eup %2908  ;;  %v2172_v35 = vadd.f32 1.0, %v2907_v32 }
 0x3b8   :  { %v2911_v38 = vpop.eup %2910  ;;  %2912 = vrcp.f32 %v2170_v33  ;;  %v2171_v40 = vadd.f32 1.0, %v2909_v34 }
 0x3b9   :  { %2914 = vrcp.f32 %v2172_v35  ;;  %v2173_v41 = vadd.f32 1.0, %v2911_v38 }
 0x3ba   :  { %2916 = vrcp.f32 %v2171_v40 }
 0x3bb   :  { %2918 = vrcp.f32 %v2173_v41 }
 0x3c3   :  { %v2521_v43 = vpop.f32.mrf.mxu0 }
 0x3c5   :  { %v2913_v45 = vpop.eup %2912  ;;  %v2522_v46 = vpop.f32.mrf.mxu0 }
 0x3c6   :  { %v2915_v47 = vpop.eup %2914  ;;  %2191 = vst [vmem:[#allocation2] sm:$0xff] %v2913_v45  ;;  %v2523_v48 = vadd.f32 %v2522_v46, %v2521_v43 }
 0x3c7   :  { %v2917_v49 = vpop.eup %2916  ;;  %2193 = vst [vmem:[#allocation2 + $0x10] sm:$0xff] %v2915_v47  ;;  %v2524_v50 = vpop.f32.mrf.mxu0 }
 0x3c8   :  { %v2919_v51 = vpop.eup %2918  ;;  %2192 = vst [vmem:[#allocation2 + $0x8] sm:$0xff] %v2917_v49  ;;  %v2144_v52 = vadd.f32 %v2523_v48, %v1402_v44 }
 0x3c9   :  { %2194 = vst [vmem:[#allocation2 + $0x18] sm:$0xff] %v2919_v51  ;;  %v2525_v53 = vpop.f32.mrf.mxu0 }
 0x3ca   :  { %v2482_v54 = vmul.f32 -1.442695, %v2144_v52 }
 0x3cc   :  { %2920 = vpow2.f32 %v2482_v54 }
 0x3d9   :  { %v2921_v55 = vpop.eup %2920 }
 0x3da   :  { %v2176_v56 = vadd.f32 1.0, %v2921_v55 }
 0x3dc   :  { %2922 = vrcp.f32 %v2176_v56 }
 0x3e3   :  { %v2102_v61 = vpop.f32.mrf.mxu1 }
 0x3e4   :  { %v2103_v62 = vadd.f32 %v2102_v61, %v1394_v59 }
 0x3e5   :  { %v2104_v63 = vpop.f32.mrf.mxu1 }
 0x3e6   :  { %v2480_v0 = vmul.f32 -1.442695, %v2103_v62  ;;  %v2105_v1 = vadd.f32 %v2104_v63, %v1398_v60 }
 0x3e7   :  { %v2106_v2 = vpop.f32.mrf.mxu1 }
 0x3e8   :  { %2924 = vpow2.f32 %v2480_v0  ;;  %v2481_v3 = vmul.f32 -1.442695, %v2105_v1 }
 0x3e9   :  { %v2923_v4 = vpop.eup %2922  ;;  %v2107_v5 = vpop.f32.mrf.mxu1 }
 0x3ea   :  { %2197 = vst [vmem:[#allocation2 + $0x30] sm:$0xff] %v2923_v4  ;;  %2926 = vpow2.f32 %v2481_v3 }
 0x3f5   :  { %v2925_v6 = vpop.eup %2924 }
 0x3f6   :  { %v2174_v7 = vadd.f32 1.0, %v2925_v6 }
 0x3f7   :  { %v2927_v8 = vpop.eup %2926 }
 0x3f8   :  { %2928 = vrcp.f32 %v2174_v7  ;;  %v2175_v9 = vadd.f32 1.0, %v2927_v8 }
 0x3fa   :  { %2930 = vrcp.f32 %v2175_v9 }
 0x405   :  { %v2929_v36 = vpop.eup %2928 }
 0x406   :  { %2195 = vst [vmem:[#allocation2 + $0x20] sm:$0xff] %v2929_v36 }
 0x407   :  { %v2931_v10 = vpop.eup %2930 }
 0x408   :  { %2196 = vst [vmem:[#allocation2 + $0x28] sm:$0xff] %v2931_v10 }
 0x409   :  { %2943 = shalt.err (!%p2940_p4)
}
 0x40a   :  { %2207 = dma.vmem_to_hbm [thread:$0]  %s2205_s8, 896, %s3843_s9, [#allocation3]  }
 0x40b   :  { %2952 = dma.done.wait [#allocation3], 896  }
 0x40c   :  { %2953 = vsyncadd [#allocation3], 4294966400 }
 0x40d   :  { %2211 = vsyncpa [#allocation3], 1 }

</bundles_post_ra>
